<compile_context>
chip_gen: v6e
topology: v6e:2x2x1
jax: 0.10.0
libtpu: 0.0.40
codegen_flags: <defaults>
</compile_context>

<pallas_src>
import jax
import jax.numpy as jnp
from jax.experimental import pallas as pl
from jax.experimental.pallas import tpu as pltpu

_LANES = 128            # lane width (last dim)
_MAX_BLOCK_ROWS = 2048  # 2048 * 128 * 4B = 1 MiB per f32 input block


def _make_kernel(block_rows, valid_rows, needs_mask):
    """Build the per-block partial-sum kernel (all parameters are static)."""

    def kernel(x_ref, t_ref, out_ref):
        x = x_ref[...].astype(jnp.float32)
        t = t_ref[...].astype(jnp.float32)
        # reciprocal runs on the EUP slot (free in a mem-bound kernel);
        # approx=False keeps full accuracy.
        contrib = jnp.abs(x - t) * pl.reciprocal(t, approx=False)

        if needs_mask:
            # Only the ragged last block can read past the array; zero those rows.
            i = pl.program_id(0)
            row_ids = i * block_rows + jax.lax.broadcasted_iota(
                jnp.int32, (block_rows, _LANES), 0)
            contrib = jnp.where(row_ids < valid_rows, contrib, jnp.float32(0.0))

        # (block_rows, 128) -> (block_rows//8, 8, 128) -> (8, 128): VPU-only fold,
        # no cross-lane reduce and no scalar accumulation on the per-step path.
        partial = contrib.reshape(block_rows // 8, 8, _LANES).sum(axis=0)
        out_ref[...] = partial

    return kernel


def procentual_loss(inp, target):
    """mean(|inp - target| / target), matching the PyTorch module."""
    assert inp.shape == target.shape
    n = inp.size
    x = jnp.ravel(inp)
    t = jnp.ravel(target)

    # Keep native dtype on the HBM side (halves read traffic for bf16/f16);
    # the kernel widens to f32 in-vreg.
    itemsize = jnp.dtype(x.dtype).itemsize
    sub = 8 * max(1, 4 // itemsize)  # sublane tile: 8 (f32) / 16 (bf16) / 32 (int8)

    rows_needed = pl.cdiv(n, _LANES) if n else 1
    if rows_needed >= _MAX_BLOCK_ROWS:
        block_rows = _MAX_BLOCK_ROWS
        rows = rows_needed
    else:
        # Small inputs: single block, rounded up to the sublane tile.
        block_rows = max(sub, ((rows_needed + sub - 1) // sub) * sub)
        rows = block_rows

    padded_n = rows * _LANES
    if padded_n != n:
        # Rare path (tiny input or element count not a multiple of 128): pad with
        # x = t = 1 so padded elements contribute exactly 0 to the sum.  The
        # 128-aligned large-array path never copies; row-block raggedness is
        # handled by the in-kernel mask instead.
        # TODO(synk): handle a non-128-multiple tail fully in-kernel to avoid this
        # copy for large unaligned inputs.
        pad = padded_n - n
        x = jnp.concatenate([x, jnp.ones((pad,), x.dtype)])
        t = jnp.concatenate([t, jnp.ones((pad,), t.dtype)])

    x2 = x.reshape(rows, _LANES)
    t2 = t.reshape(rows, _LANES)

    num_blocks = pl.cdiv(rows, block_rows)
    needs_mask = (rows % block_rows) != 0

    kernel = _make_kernel(block_rows, rows, needs_mask)

    partials = pl.pallas_call(
        kernel,
        out_shape=jax.ShapeDtypeStruct((num_blocks * 8, _LANES), jnp.float32),
        grid=(num_blocks,),
        in_specs=[
            pl.BlockSpec((block_rows, _LANES), lambda i: (i, 0)),
            pl.BlockSpec((block_rows, _LANES), lambda i: (i, 0)),
        ],
        out_specs=pl.BlockSpec((8, _LANES), lambda i: (i, 0)),
        compiler_params=pltpu.CompilerParams(
            # No cross-step carry -> independent blocks -> megacore-friendly.
            dimension_semantics=("parallel",),
        ),
    )(x2, t2)

    total = jnp.sum(partials, dtype=jnp.float32)
    return (total / jnp.float32(n)).astype(inp.dtype)


if __name__ == "__main__":
    key = jax.random.PRNGKey(0)
    k1, k2 = jax.random.split(key)

    # Small shapes consistent with a generic regression target (model outputs).
    shape = (2, 4, 16, 16)
    inp = jax.random.normal(k1, shape, dtype=jnp.float32)
    # Keep target strictly positive / away from zero to match typical usage.
    target = jax.random.uniform(k2, shape, dtype=jnp.float32, minval=0.5, maxval=2.0)

    out = jax.jit(procentual_loss)(inp, target)
    jax.block_until_ready(out)

    # Cross-check against plain-JAX reference.
    ref = jnp.mean(jnp.abs(inp - target) / target)
    assert jnp.allclose(out, ref, rtol=1e-5, atol=1e-6), (out, ref)

    print("KERNEL_OK")
</pallas_src>

<mosaic_0001>
module attributes {stable_mosaic.version = 11 : i64} {
  func.func @kernel(%arg0: i32, %arg1: memref<16x128xf32, #tpu.memory_space<vmem>>, %arg2: memref<16x128xf32, #tpu.memory_space<vmem>>, %arg3: memref<8x128xf32, #tpu.memory_space<vmem>>) attributes {dimension_semantics = [#tpu.dimension_semantics<parallel>], iteration_bounds = array<i64: 1>, scalar_prefetch = 0 : i64, scratch_operands = 0 : i64, tpu.core_type = #tpu.core_type<tc>, window_params = [{transform_indices = @transform_0, window_bounds = array<i64: 16, 128>}, {transform_indices = @transform_1, window_bounds = array<i64: 16, 128>}, {transform_indices = @transform_2, window_bounds = array<i64: 8, 128>}]} {
    %c0 = arith.constant 0 : index
    %c0_0 = arith.constant 0 : index
    %0 = vector.load %arg1[%c0, %c0_0] : memref<16x128xf32, #tpu.memory_space<vmem>>, vector<16x128xf32>
    %c0_1 = arith.constant 0 : index
    %c0_2 = arith.constant 0 : index
    %1 = vector.load %arg2[%c0_1, %c0_2] : memref<16x128xf32, #tpu.memory_space<vmem>>, vector<16x128xf32>
    %2 = arith.subf %0, %1 : vector<16x128xf32>
    %3 = math.absf %2 : vector<16x128xf32>
    %4 = tpu.reciprocal %1 : vector<16x128xf32> -> vector<16x128xf32>
    %5 = arith.mulf %3, %4 : vector<16x128xf32>
    %6 = vector.shape_cast %5 : vector<16x128xf32> to vector<2x8x128xf32>
    %cst = arith.constant dense<0.000000e+00> : vector<8x128xf32>
    %7 = vector.multi_reduction <add>, %6, %cst [0] : vector<2x8x128xf32> to vector<8x128xf32>
    %c0_3 = arith.constant 0 : index
    %c0_4 = arith.constant 0 : index
    %8 = vector.load %arg3[%c0_3, %c0_4] : memref<8x128xf32, #tpu.memory_space<vmem>>, vector<8x128xf32>
    tpu.vector_store %arg3[%c0_3, %c0_4], %7 {strides = array<i32>} : memref<8x128xf32, #tpu.memory_space<vmem>>, vector<8x128xf32>,
    return
  }
  func.func @transform_0(%arg0: i32) -> (i32, i32) {
    %c0_i32 = arith.constant 0 : i32
    %c0_i32_0 = arith.constant 0 : i32
    return %arg0, %c0_i32 : i32, i32
  }
  func.func @transform_1(%arg0: i32) -> (i32, i32) {
    %c0_i32 = arith.constant 0 : i32
    %c0_i32_0 = arith.constant 0 : i32
    return %arg0, %c0_i32 : i32, i32
  }
  func.func @transform_2(%arg0: i32) -> (i32, i32) {
    %c0_i32 = arith.constant 0 : i32
    %c0_i32_0 = arith.constant 0 : i32
    return %arg0, %c0_i32 : i32, i32
  }
}

</mosaic_0001>

<bundles_post_ra>
// kernel: procentual_loss.1
= control target key start
LH: loop header
LB: loop body
LE: loop exit
PB: predicated region body
PF: predicated region fallthrough
CT: control target
= control target key end

     0   :  { %s63_s1 = inlined_call_operand.vmem [shape: f32[16,128], index: 1, kind: input, shape index: {}]   ;;  %s64_s0 = inlined_call_operand.vmem [shape: f32[16,128], index: 0, kind: input, shape index: {}]   ;;  %s65_s2 = inlined_call_operand.vmem [shape: f32[8,128], index: 2, kind: output, shape index: {}]  }
   0x1   :  { %v13_v0 = vld [vmem:[%s63_s1] sm:$0xff]  ;;  %v14_v1 = vld [vmem:[%s63_s1 + $0x8] sm:$0xff] }
   0x2   :  { %29 = vrcp.f32 %v13_v0  ;;  %v11_v2 = vld [vmem:[%s64_s0] sm:$0xff]  ;;  %v12_v3 = vld [vmem:[%s64_s0 + $0x8] sm:$0xff] }
   0x3   :  { %31 = vrcp.f32 %v14_v1  ;;  %v15_v4 = vsub.f32 %v11_v2, %v13_v0  ;;  %v16_v5 = vsub.f32 %v12_v3, %v14_v1 }
   0x5   :  { %v17_v6 = vand.u32 2147483647, %v15_v4  ;;  %v18_v7 = vand.u32 2147483647, %v16_v5 }
   0xf   :  { %v30_v8 = vpop.eup %29 }
  0x10   :  { %v32_v9 = vpop.eup %31  ;;  %v21_v10 = vmul.f32 %v30_v8, %v17_v6 }
  0x11   :  { %v22_v11 = vmul.f32 %v32_v9, %v18_v7 }
  0x13   :  { %v23_v12 = vadd.f32 %v22_v11, %v21_v10 }
  0x15   :  { %24 = vst [vmem:[%s65_s2] sm:$0xff] %v23_v12 }

</bundles_post_ra>
